<compile_context>
chip_gen: v5e
topology: v5e:2x2
jax: 0.10.0
libtpu: 0.0.40
codegen_flags: <defaults>
</compile_context>

<pallas_src>
import numpy as np
import jax
import jax.numpy as jnp
from jax.experimental import pallas as pl
from jax.experimental.pallas import tpu as pltpu


def _bertology_kernel(tok_ref, ner_ref, sent_ref, wqkv_ref, bias_ref,
                      hsum_ref, bcast_ref, wfold_ref, wc_ref, out_ref):
    H = tok_ref.shape[1]            # hidden size (32)
    W = 3 * H                       # packed lane width: [tok | ner | sent]
    NH3 = hsum_ref.shape[1]         # 3 * num_heads
    Lp = wc_ref.shape[1]            # padded label lanes

    # Lane-pack the three embedding streams (f32 concat, then one bf16 cast).
    x = jnp.concatenate([tok_ref[...], ner_ref[...], sent_ref[...]],
                        axis=-1).astype(jnp.bfloat16)                 # (bn, 3H)

    # Block-diagonal in-projections; 1/sqrt(head_dim) is folded into Q.
    q = jnp.dot(x, wqkv_ref[0:W, :],
                preferred_element_type=jnp.float32) + bias_ref[0:1, 0:W]
    k = jnp.dot(x, wqkv_ref[W:2 * W, :],
                preferred_element_type=jnp.float32) + bias_ref[1:2, 0:W]
    v = jnp.dot(x, wqkv_ref[2 * W:3 * W, :],
                preferred_element_type=jnp.float32) + bias_ref[2:3, 0:W]

    # Rotate keys by one / two streams (32-lane shifts) so every
    # (query-stream, key-stream) pair is a lane-aligned elementwise product.
    k1 = jnp.concatenate([k[:, H:], k[:, :H]], axis=-1)
    k2 = jnp.concatenate([k[:, 2 * H:], k[:, :2 * H]], axis=-1)

    # Per-head score reductions: one 0/1 matmul per rotation.
    hsum = hsum_ref[...]
    s0 = jnp.dot((q * k).astype(jnp.bfloat16), hsum,
                 preferred_element_type=jnp.float32)                  # (bn, 3*nh)
    s1 = jnp.dot((q * k1).astype(jnp.bfloat16), hsum,
                 preferred_element_type=jnp.float32)
    s2 = jnp.dot((q * k2).astype(jnp.bfloat16), hsum,
                 preferred_element_type=jnp.float32)

    # Softmax over the three key streams (same lane <-> same query stream/head).
    m = jnp.maximum(jnp.maximum(s0, s1), s2)
    e0 = jnp.exp(s0 - m)
    e1 = jnp.exp(s1 - m)
    e2 = jnp.exp(s2 - m)
    inv = pl.reciprocal(e0 + e1 + e2, approx=True)
    p0 = (e0 * inv).astype(jnp.bfloat16)
    p1 = (e1 * inv).astype(jnp.bfloat16)
    p2 = (e2 * inv).astype(jnp.bfloat16)

    # Scatter probabilities back to the head lanes of the matching value
    # stream, summed over query streams (0/1 matmuls).
    pb = (jnp.dot(p0, bcast_ref[0:NH3, :], preferred_element_type=jnp.float32)
          + jnp.dot(p1, bcast_ref[NH3:2 * NH3, :],
                    preferred_element_type=jnp.float32)
          + jnp.dot(p2, bcast_ref[2 * NH3:3 * NH3, :],
                    preferred_element_type=jnp.float32))              # (bn, 3H)

    # Attention values; seq-mean and the out-projection are fused into wfold
    # (= [Wo; Wo; Wo] / 3), since the mean commutes with the linear layer.
    ov = (pb * v).astype(jnp.bfloat16)
    attn_mean = jnp.dot(ov, wfold_ref[...],
                        preferred_element_type=jnp.float32) + bias_ref[3:4, 0:H]

    # relu -> classifier -> log_softmax.  Pad label lanes carry a -1e30 bias,
    # so their exp underflows to 0 and the normalizer stays exact.
    h = jnp.maximum(attn_mean, 0.0).astype(jnp.bfloat16)
    logits = jnp.dot(h, wc_ref[...],
                     preferred_element_type=jnp.float32) + bias_ref[4:5, 0:Lp]
    mx = jnp.max(logits, axis=-1, keepdims=True)
    z = logits - mx
    lse = jnp.log(jnp.sum(jnp.exp(z), axis=-1, keepdims=True))
    out_ref[...] = z - lse


def _round_up(x, m):
    return (x + m - 1) // m * m


def bertology_head(tok, ner, sent, params, *, num_heads=8, block_n=None):
    """tok/ner/sent: (N, H) float gathered token embeddings (3 backbones)."""
    N, H = tok.shape
    assert H % num_heads == 0
    hd = H // num_heads
    W = 3 * H
    L = params["wc"].shape[0]
    Lp = _round_up(L, 8)            # narrow output: Lp == full last dim -> legal

    # Block size: aim for >=2 grid blocks (v7x megacore) for small N,
    # cap at 512 so per-step VMEM stays small on every generation.
    if block_n is None:
        block_n = int(min(512, _round_up(max(8, (N + 1) // 2), 8)))
    Np = _round_up(N, block_n)
    nblk = Np // block_n
    pad = Np - N

    def prep(a):
        a = a.astype(jnp.float32)
        if pad:
            a = jnp.pad(a, ((0, pad), (0, 0)))
        return a

    tok_p, ner_p, sent_p = prep(tok), prep(ner), prep(sent)

    # ---- host-side weight packing (done once, outside the kernel) ----------
    scale = 1.0 / np.sqrt(hd)
    w_in = np.asarray(params["in_proj_w"], np.float32)
    b_in = np.asarray(params["in_proj_b"], np.float32)
    wq = w_in[0:H].T * scale                      # q = x @ wq (scale folded in)
    wk = w_in[H:2 * H].T
    wv = w_in[2 * H:3 * H].T
    wo = np.asarray(params["out_proj_w"], np.float32).T
    bo = np.asarray(params["out_proj_b"], np.float32)
    wc = np.asarray(params["wc"], np.float32)
    bc = np.asarray(params["bc"], np.float32)

    def blockdiag3(w):
        z = np.zeros((W, W), np.float32)
        for s in range(3):
            z[s * H:(s + 1) * H, s * H:(s + 1) * H] = w
        return z

    wqkv = np.concatenate([blockdiag3(wq), blockdiag3(wk), blockdiag3(wv)],
                          axis=0)                                    # (3W, W)

    bias_w = max(W, Lp)
    bias = np.zeros((5, bias_w), np.float32)
    bias[0, 0:W] = np.tile(b_in[0:H] * scale, 3)
    bias[1, 0:W] = np.tile(b_in[H:2 * H], 3)
    bias[2, 0:W] = np.tile(b_in[2 * H:3 * H], 3)
    bias[3, 0:H] = bo
    bias[4, 0:Lp] = -1e30                        # pad label lanes -> exp == 0
    bias[4, 0:L] = bc

    lanes = np.arange(W)
    stream = lanes // H
    head = (lanes % H) // hd
    hsum = np.zeros((W, 3 * num_heads), np.float32)       # head-sum selector
    hsum[lanes, stream * num_heads + head] = 1.0

    bcast = np.zeros((3, 3 * num_heads, W), np.float32)   # prob -> value lanes
    for r in range(3):
        for i in range(3):
            j = (i + r) % 3
            for h in range(num_heads):
                bcast[r, i * num_heads + h,
                      j * H + h * hd: j * H + (h + 1) * hd] = 1.0
    bcast = bcast.reshape(9 * num_heads, W)

    wfold = np.concatenate([wo, wo, wo], axis=0) / 3.0     # seq-mean + out-proj

    wc_t = np.zeros((H, Lp), np.float32)
    wc_t[:, 0:L] = wc.T

    bf = lambda a: jnp.asarray(a, jnp.bfloat16)
    wqkv_d, hsum_d, bcast_d, wfold_d, wc_d = map(
        bf, (wqkv, hsum, bcast, wfold, wc_t))
    bias_d = jnp.asarray(bias, jnp.float32)

    full = lambda i: (0, 0)
    tile = lambda i: (i, 0)

    out = pl.pallas_call(
        _bertology_kernel,
        out_shape=jax.ShapeDtypeStruct((Np, Lp), jnp.float32),
        grid_spec=pltpu.PrefetchScalarGridSpec(
            num_scalar_prefetch=0,
            grid=(nblk,),
            in_specs=[
                pl.BlockSpec((block_n, H), tile),            # tok
                pl.BlockSpec((block_n, H), tile),            # ner
                pl.BlockSpec((block_n, H), tile),            # sentiment
                pl.BlockSpec((3 * W, W), full),              # packed q/k/v weights
                pl.BlockSpec((5, bias_w), full),             # packed biases
                pl.BlockSpec((W, 3 * num_heads), full),      # head-sum matrix
                pl.BlockSpec((9 * num_heads, W), full),      # prob-scatter matrices
                pl.BlockSpec((W, H), full),                  # [Wo;Wo;Wo]/3
                pl.BlockSpec((H, Lp), full),                 # classifier weight
            ],
            out_specs=pl.BlockSpec((block_n, Lp), tile),
        ),
        compiler_params=pltpu.CompilerParams(
            dimension_semantics=("parallel",)),
    )(tok_p, ner_p, sent_p, wqkv_d, bias_d, hsum_d, bcast_d, wfold_d, wc_d)
    return out[:N, :L]


def init_params(key, hidden, label_num):
    ks = jax.random.split(key, 6)
    s = 0.05
    return {
        "in_proj_w": s * jax.random.normal(ks[0], (3 * hidden, hidden), jnp.float32),
        "in_proj_b": s * jax.random.normal(ks[1], (3 * hidden,), jnp.float32),
        "out_proj_w": s * jax.random.normal(ks[2], (hidden, hidden), jnp.float32),
        "out_proj_b": s * jax.random.normal(ks[3], (hidden,), jnp.float32),
        "wc": s * jax.random.normal(ks[4], (label_num, hidden), jnp.float32),
        "bc": s * jax.random.normal(ks[5], (label_num,), jnp.float32),
    }


def _reference(tok, ner, sent, params, num_heads=8):
    """Pure-JAX f32 reference of the head (matches nn.MultiheadAttention math)."""
    N, H = tok.shape
    hd = H // num_heads
    x = jnp.stack([tok, ner, sent], axis=1)                       # (N, 3, H)
    w_in, b_in = params["in_proj_w"], params["in_proj_b"]
    q = x @ w_in[0:H].T + b_in[0:H]
    k = x @ w_in[H:2 * H].T + b_in[H:2 * H]
    v = x @ w_in[2 * H:3 * H].T + b_in[2 * H:3 * H]
    split = lambda a: a.reshape(N, 3, num_heads, hd).transpose(0, 2, 1, 3)
    qh, kh, vh = split(q), split(k), split(v)
    s = jnp.einsum('nhid,nhjd->nhij', qh, kh) / np.sqrt(hd)
    p = jax.nn.softmax(s, axis=-1)
    o = jnp.einsum('nhij,nhjd->nhid', p, vh)
    o = o.transpose(0, 2, 1, 3).reshape(N, 3, H)
    attn = o @ params["out_proj_w"].T + params["out_proj_b"]
    h = jax.nn.relu(attn.mean(axis=1))
    logits = h @ params["wc"].T + params["bc"]
    return jax.nn.log_softmax(logits, axis=-1)


if __name__ == "__main__":
    B, S, H = 2, 16, 32        # batch, max seq, hidden_size
    LABELS = 9
    lengths = [6, 10]          # batchTextTokensLength

    key = jax.random.PRNGKey(0)
    k1, k2, k3, kp = jax.random.split(key, 4)

    # Simulated backbone outputs (last_hidden_state of the 3 models).
    lhs = jax.random.normal(k1, (B, S, H), jnp.float32)
    ner_lhs = jax.random.normal(k2, (B, S, H), jnp.float32)
    sent_lhs = jax.random.normal(k3, (B, S, H), jnp.float32)

    # Glue: gather tokens [1 : 1+length] per sample and concat over the batch.
    gather = lambda a: jnp.concatenate(
        [a[i, 1:1 + l] for i, l in enumerate(lengths)], axis=0)
    tok = gather(lhs)          # (N, H), N = sum(lengths) = 16
    ner = gather(ner_lhs)
    sent = gather(sent_lhs)

    params = init_params(kp, H, LABELS)

    out = bertology_head(tok, ner, sent, params, num_heads=8)
    out = jax.block_until_ready(out)

    assert out.shape == (sum(lengths), LABELS)
    # sanity: rows of log_softmax exponentiate-sum to 1
    assert np.allclose(np.exp(np.asarray(out)).sum(-1), 1.0, atol=1e-4)
    # correctness vs pure-JAX f32 reference (bf16 matmuls -> loose tolerance)
    ref = np.asarray(_reference(tok, ner, sent, params, num_heads=8))
    assert np.allclose(np.asarray(out), ref, atol=1e-2), \
        np.abs(np.asarray(out) - ref).max()
    print("KERNEL_OK")
</pallas_src>

<mosaic_0001>
module attributes {stable_mosaic.version = 11 : i64} {
  func.func @_bertology_kernel(%arg0: i32, %arg1: memref<8x32xf32, #tpu.memory_space<vmem>>, %arg2: memref<8x32xf32, #tpu.memory_space<vmem>>, %arg3: memref<8x32xf32, #tpu.memory_space<vmem>>, %arg4: memref<288x96xbf16, #tpu.memory_space<vmem>>, %arg5: memref<5x96xf32, #tpu.memory_space<vmem>>, %arg6: memref<96x24xbf16, #tpu.memory_space<vmem>>, %arg7: memref<72x96xbf16, #tpu.memory_space<vmem>>, %arg8: memref<96x32xbf16, #tpu.memory_space<vmem>>, %arg9: memref<32x16xbf16, #tpu.memory_space<vmem>>, %arg10: memref<8x16xf32, #tpu.memory_space<vmem>>) attributes {dimension_semantics = [#tpu.dimension_semantics<parallel>], iteration_bounds = array<i64: 2>, scalar_prefetch = 0 : i64, scratch_operands = 0 : i64, tpu.core_type = #tpu.core_type<tc>, window_params = [{transform_indices = @transform_0, window_bounds = array<i64: 8, 32>}, {transform_indices = @transform_1, window_bounds = array<i64: 8, 32>}, {transform_indices = @transform_2, window_bounds = array<i64: 8, 32>}, {pipeline_mode = #tpu.pipeline_mode<synchronous>, transform_indices = @transform_3, window_bounds = array<i64: 288, 96>}, {pipeline_mode = #tpu.pipeline_mode<synchronous>, transform_indices = @transform_4, window_bounds = array<i64: 5, 96>}, {pipeline_mode = #tpu.pipeline_mode<synchronous>, transform_indices = @transform_5, window_bounds = array<i64: 96, 24>}, {pipeline_mode = #tpu.pipeline_mode<synchronous>, transform_indices = @transform_6, window_bounds = array<i64: 72, 96>}, {pipeline_mode = #tpu.pipeline_mode<synchronous>, transform_indices = @transform_7, window_bounds = array<i64: 96, 32>}, {pipeline_mode = #tpu.pipeline_mode<synchronous>, transform_indices = @transform_8, window_bounds = array<i64: 32, 16>}, {transform_indices = @transform_9, window_bounds = array<i64: 8, 16>}]} {
    %c0 = arith.constant 0 : index
    %c0_0 = arith.constant 0 : index
    %0 = vector.load %arg1[%c0, %c0_0] : memref<8x32xf32, #tpu.memory_space<vmem>>, vector<8x32xf32>
    %c0_1 = arith.constant 0 : index
    %c0_2 = arith.constant 0 : index
    %1 = vector.load %arg2[%c0_1, %c0_2] : memref<8x32xf32, #tpu.memory_space<vmem>>, vector<8x32xf32>
    %c0_3 = arith.constant 0 : index
    %c0_4 = arith.constant 0 : index
    %2 = vector.load %arg3[%c0_3, %c0_4] : memref<8x32xf32, #tpu.memory_space<vmem>>, vector<8x32xf32>
    %3 = tpu.concatenate %0, %1, %2 in 1 : vector<8x32xf32>, vector<8x32xf32>, vector<8x32xf32> -> vector<8x96xf32>
    %4 = arith.truncf %3 : vector<8x96xf32> to vector<8x96xbf16>
    %c0_5 = arith.constant 0 : index
    %c0_6 = arith.constant 0 : index
    %5 = vector.load %arg4[%c0_5, %c0_6] : memref<288x96xbf16, #tpu.memory_space<vmem>>, vector<96x96xbf16>
    %cst = arith.constant dense<0.000000e+00> : vector<8x96xf32>
    %6 = tpu.matmul %4, %5, %cst {dimension_numbers = #tpu.dot_dimension_numbers<[1], [0], [0], [1], [0, 0, 1, 1], [], []>} : vector<8x96xbf16>, vector<96x96xbf16>, vector<8x96xf32> -> vector<8x96xf32>
    %c0_7 = arith.constant 0 : index
    %c0_8 = arith.constant 0 : index
    %7 = vector.load %arg5[%c0_7, %c0_8] : memref<5x96xf32, #tpu.memory_space<vmem>>, vector<1x96xf32>
    %8 = vector.broadcast %7 : vector<1x96xf32> to vector<8x96xf32>
    %9 = arith.addf %6, %8 : vector<8x96xf32>
    %c96 = arith.constant 96 : index
    %c0_9 = arith.constant 0 : index
    %10 = vector.load %arg4[%c96, %c0_9] : memref<288x96xbf16, #tpu.memory_space<vmem>>, vector<96x96xbf16>
    %cst_10 = arith.constant dense<0.000000e+00> : vector<8x96xf32>
    %11 = tpu.matmul %4, %10, %cst_10 {dimension_numbers = #tpu.dot_dimension_numbers<[1], [0], [0], [1], [0, 0, 1, 1], [], []>} : vector<8x96xbf16>, vector<96x96xbf16>, vector<8x96xf32> -> vector<8x96xf32>
    %c1 = arith.constant 1 : index
    %c0_11 = arith.constant 0 : index
    %12 = vector.load %arg5[%c1, %c0_11] : memref<5x96xf32, #tpu.memory_space<vmem>>, vector<1x96xf32>
    %13 = vector.broadcast %12 : vector<1x96xf32> to vector<8x96xf32>
    %14 = arith.addf %11, %13 : vector<8x96xf32>
    %c192 = arith.constant 192 : index
    %c0_12 = arith.constant 0 : index
    %15 = vector.load %arg4[%c192, %c0_12] : memref<288x96xbf16, #tpu.memory_space<vmem>>, vector<96x96xbf16>
    %cst_13 = arith.constant dense<0.000000e+00> : vector<8x96xf32>
    %16 = tpu.matmul %4, %15, %cst_13 {dimension_numbers = #tpu.dot_dimension_numbers<[1], [0], [0], [1], [0, 0, 1, 1], [], []>} : vector<8x96xbf16>, vector<96x96xbf16>, vector<8x96xf32> -> vector<8x96xf32>
    %c2 = arith.constant 2 : index
    %c0_14 = arith.constant 0 : index
    %17 = vector.load %arg5[%c2, %c0_14] : memref<5x96xf32, #tpu.memory_space<vmem>>, vector<1x96xf32>
    %18 = vector.broadcast %17 : vector<1x96xf32> to vector<8x96xf32>
    %19 = arith.addf %16, %18 : vector<8x96xf32>
    %20 = vector.extract_strided_slice %14 {offsets = [0, 32], sizes = [8, 64], strides = [1, 1]} : vector<8x96xf32> to vector<8x64xf32>
    %21 = vector.extract_strided_slice %14 {offsets = [0, 0], sizes = [8, 32], strides = [1, 1]} : vector<8x96xf32> to vector<8x32xf32>
    %22 = tpu.concatenate %20, %21 in 1 : vector<8x64xf32>, vector<8x32xf32> -> vector<8x96xf32>
    %23 = vector.extract_strided_slice %14 {offsets = [0, 64], sizes = [8, 32], strides = [1, 1]} : vector<8x96xf32> to vector<8x32xf32>
    %24 = vector.extract_strided_slice %14 {offsets = [0, 0], sizes = [8, 64], strides = [1, 1]} : vector<8x96xf32> to vector<8x64xf32>
    %25 = tpu.concatenate %23, %24 in 1 : vector<8x32xf32>, vector<8x64xf32> -> vector<8x96xf32>
    %c0_15 = arith.constant 0 : index
    %c0_16 = arith.constant 0 : index
    %26 = vector.load %arg6[%c0_15, %c0_16] : memref<96x24xbf16, #tpu.memory_space<vmem>>, vector<96x24xbf16>
    %27 = arith.mulf %9, %14 : vector<8x96xf32>
    %28 = arith.truncf %27 : vector<8x96xf32> to vector<8x96xbf16>
    %cst_17 = arith.constant dense<0.000000e+00> : vector<8x24xf32>
    %29 = tpu.matmul %28, %26, %cst_17 {dimension_numbers = #tpu.dot_dimension_numbers<[1], [0], [0], [1], [0, 0, 1, 1], [], []>} : vector<8x96xbf16>, vector<96x24xbf16>, vector<8x24xf32> -> vector<8x24xf32>
    %30 = arith.mulf %9, %22 : vector<8x96xf32>
    %31 = arith.truncf %30 : vector<8x96xf32> to vector<8x96xbf16>
    %cst_18 = arith.constant dense<0.000000e+00> : vector<8x24xf32>
    %32 = tpu.matmul %31, %26, %cst_18 {dimension_numbers = #tpu.dot_dimension_numbers<[1], [0], [0], [1], [0, 0, 1, 1], [], []>} : vector<8x96xbf16>, vector<96x24xbf16>, vector<8x24xf32> -> vector<8x24xf32>
    %33 = arith.mulf %9, %25 : vector<8x96xf32>
    %34 = arith.truncf %33 : vector<8x96xf32> to vector<8x96xbf16>
    %cst_19 = arith.constant dense<0.000000e+00> : vector<8x24xf32>
    %35 = tpu.matmul %34, %26, %cst_19 {dimension_numbers = #tpu.dot_dimension_numbers<[1], [0], [0], [1], [0, 0, 1, 1], [], []>} : vector<8x96xbf16>, vector<96x24xbf16>, vector<8x24xf32> -> vector<8x24xf32>
    %36 = arith.maximumf %29, %32 : vector<8x24xf32>
    %37 = arith.maximumf %36, %35 : vector<8x24xf32>
    %38 = arith.subf %29, %37 : vector<8x24xf32>
    %39 = math.exp %38 : vector<8x24xf32>
    %40 = arith.subf %32, %37 : vector<8x24xf32>
    %41 = math.exp %40 : vector<8x24xf32>
    %42 = arith.subf %35, %37 : vector<8x24xf32>
    %43 = math.exp %42 : vector<8x24xf32>
    %44 = arith.addf %39, %41 : vector<8x24xf32>
    %45 = arith.addf %44, %43 : vector<8x24xf32>
    %46 = tpu.reciprocal %45 {approx = true} : vector<8x24xf32> -> vector<8x24xf32>
    %47 = arith.mulf %39, %46 : vector<8x24xf32>
    %48 = arith.truncf %47 : vector<8x24xf32> to vector<8x24xbf16>
    %49 = arith.mulf %41, %46 : vector<8x24xf32>
    %50 = arith.truncf %49 : vector<8x24xf32> to vector<8x24xbf16>
    %51 = arith.mulf %43, %46 : vector<8x24xf32>
    %52 = arith.truncf %51 : vector<8x24xf32> to vector<8x24xbf16>
    %c0_20 = arith.constant 0 : index
    %c0_21 = arith.constant 0 : index
    %53 = vector.load %arg7[%c0_20, %c0_21] : memref<72x96xbf16, #tpu.memory_space<vmem>>, vector<24x96xbf16>
    %cst_22 = arith.constant dense<0.000000e+00> : vector<8x96xf32>
    %54 = tpu.matmul %48, %53, %cst_22 {dimension_numbers = #tpu.dot_dimension_numbers<[1], [0], [0], [1], [0, 0, 1, 1], [], []>} : vector<8x24xbf16>, vector<24x96xbf16>, vector<8x96xf32> -> vector<8x96xf32>
    %c24 = arith.constant 24 : index
    %c0_23 = arith.constant 0 : index
    %55 = vector.load %arg7[%c24, %c0_23] : memref<72x96xbf16, #tpu.memory_space<vmem>>, vector<24x96xbf16>
    %cst_24 = arith.constant dense<0.000000e+00> : vector<8x96xf32>
    %56 = tpu.matmul %50, %55, %cst_24 {dimension_numbers = #tpu.dot_dimension_numbers<[1], [0], [0], [1], [0, 0, 1, 1], [], []>} : vector<8x24xbf16>, vector<24x96xbf16>, vector<8x96xf32> -> vector<8x96xf32>
    %57 = arith.addf %54, %56 : vector<8x96xf32>
    %c48 = arith.constant 48 : index
    %c0_25 = arith.constant 0 : index
    %58 = vector.load %arg7[%c48, %c0_25] : memref<72x96xbf16, #tpu.memory_space<vmem>>, vector<24x96xbf16>
    %cst_26 = arith.constant dense<0.000000e+00> : vector<8x96xf32>
    %59 = tpu.matmul %52, %58, %cst_26 {dimension_numbers = #tpu.dot_dimension_numbers<[1], [0], [0], [1], [0, 0, 1, 1], [], []>} : vector<8x24xbf16>, vector<24x96xbf16>, vector<8x96xf32> -> vector<8x96xf32>
    %60 = arith.addf %57, %59 : vector<8x96xf32>
    %61 = arith.mulf %60, %19 : vector<8x96xf32>
    %62 = arith.truncf %61 : vector<8x96xf32> to vector<8x96xbf16>
    %c0_27 = arith.constant 0 : index
    %c0_28 = arith.constant 0 : index
    %63 = vector.load %arg8[%c0_27, %c0_28] : memref<96x32xbf16, #tpu.memory_space<vmem>>, vector<96x32xbf16>
    %cst_29 = arith.constant dense<0.000000e+00> : vector<8x32xf32>
    %64 = tpu.matmul %62, %63, %cst_29 {dimension_numbers = #tpu.dot_dimension_numbers<[1], [0], [0], [1], [0, 0, 1, 1], [], []>} : vector<8x96xbf16>, vector<96x32xbf16>, vector<8x32xf32> -> vector<8x32xf32>
    %c3 = arith.constant 3 : index
    %c0_30 = arith.constant 0 : index
    %65 = vector.load %arg5[%c3, %c0_30] : memref<5x96xf32, #tpu.memory_space<vmem>>, vector<1x32xf32>
    %66 = vector.broadcast %65 : vector<1x32xf32> to vector<8x32xf32>
    %67 = arith.addf %64, %66 : vector<8x32xf32>
    %cst_31 = arith.constant 0.000000e+00 : f32
    %68 = vector.broadcast %cst_31 : f32 to vector<8x32xf32>
    %69 = arith.maximumf %67, %68 : vector<8x32xf32>
    %70 = arith.truncf %69 : vector<8x32xf32> to vector<8x32xbf16>
    %c0_32 = arith.constant 0 : index
    %c0_33 = arith.constant 0 : index
    %71 = vector.load %arg9[%c0_32, %c0_33] : memref<32x16xbf16, #tpu.memory_space<vmem>>, vector<32x16xbf16>
    %cst_34 = arith.constant dense<0.000000e+00> : vector<8x16xf32>
    %72 = tpu.matmul %70, %71, %cst_34 {dimension_numbers = #tpu.dot_dimension_numbers<[1], [0], [0], [1], [0, 0, 1, 1], [], []>} : vector<8x32xbf16>, vector<32x16xbf16>, vector<8x16xf32> -> vector<8x16xf32>
    %c4 = arith.constant 4 : index
    %c0_35 = arith.constant 0 : index
    %73 = vector.load %arg5[%c4, %c0_35] : memref<5x96xf32, #tpu.memory_space<vmem>>, vector<1x16xf32>
    %74 = vector.broadcast %73 : vector<1x16xf32> to vector<8x16xf32>
    %75 = arith.addf %72, %74 : vector<8x16xf32>
    %cst_36 = arith.constant dense<0xFF800000> : vector<8xf32>
    %76 = vector.multi_reduction <maximumf>, %75, %cst_36 [1] : vector<8x16xf32> to vector<8xf32>
    %77 = vector.shape_cast %76 : vector<8xf32> to vector<8x1xf32>
    %78 = vector.broadcast %77 : vector<8x1xf32> to vector<8x16xf32>
    %79 = arith.subf %75, %78 : vector<8x16xf32>
    %80 = math.exp %79 : vector<8x16xf32>
    %cst_37 = arith.constant dense<0.000000e+00> : vector<8xf32>
    %81 = vector.multi_reduction <add>, %80, %cst_37 [1] : vector<8x16xf32> to vector<8xf32>
    %82 = vector.shape_cast %81 : vector<8xf32> to vector<8x1xf32>
    %83 = math.log %82 : vector<8x1xf32>
    %84 = vector.broadcast %83 : vector<8x1xf32> to vector<8x16xf32>
    %85 = arith.subf %79, %84 : vector<8x16xf32>
    %c0_38 = arith.constant 0 : index
    %c0_39 = arith.constant 0 : index
    %86 = vector.load %arg10[%c0_38, %c0_39] : memref<8x16xf32, #tpu.memory_space<vmem>>, vector<8x16xf32>
    tpu.vector_store %arg10[%c0_38, %c0_39], %85 {strides = array<i32>} : memref<8x16xf32, #tpu.memory_space<vmem>>, vector<8x16xf32>,
    return
  }
  func.func @transform_0(%arg0: i32) -> (i32, i32) {
    %c0_i32 = arith.constant 0 : i32
    %c0_i32_0 = arith.constant 0 : i32
    return %arg0, %c0_i32 : i32, i32
  }
  func.func @transform_1(%arg0: i32) -> (i32, i32) {
    %c0_i32 = arith.constant 0 : i32
    %c0_i32_0 = arith.constant 0 : i32
    return %arg0, %c0_i32 : i32, i32
  }
  func.func @transform_2(%arg0: i32) -> (i32, i32) {
    %c0_i32 = arith.constant 0 : i32
    %c0_i32_0 = arith.constant 0 : i32
    return %arg0, %c0_i32 : i32, i32
  }
  func.func @transform_3(%arg0: i32) -> (i32, i32) {
    %c0_i32 = arith.constant 0 : i32
    %c0_i32_0 = arith.constant 0 : i32
    %c0_i32_1 = arith.constant 0 : i32
    return %c0_i32, %c0_i32_0 : i32, i32
  }
  func.func @transform_4(%arg0: i32) -> (i32, i32) {
    %c0_i32 = arith.constant 0 : i32
    %c0_i32_0 = arith.constant 0 : i32
    %c0_i32_1 = arith.constant 0 : i32
    return %c0_i32, %c0_i32_0 : i32, i32
  }
  func.func @transform_5(%arg0: i32) -> (i32, i32) {
    %c0_i32 = arith.constant 0 : i32
    %c0_i32_0 = arith.constant 0 : i32
    %c0_i32_1 = arith.constant 0 : i32
    return %c0_i32, %c0_i32_0 : i32, i32
  }
  func.func @transform_6(%arg0: i32) -> (i32, i32) {
    %c0_i32 = arith.constant 0 : i32
    %c0_i32_0 = arith.constant 0 : i32
    %c0_i32_1 = arith.constant 0 : i32
    return %c0_i32, %c0_i32_0 : i32, i32
  }
  func.func @transform_7(%arg0: i32) -> (i32, i32) {
    %c0_i32 = arith.constant 0 : i32
    %c0_i32_0 = arith.constant 0 : i32
    %c0_i32_1 = arith.constant 0 : i32
    return %c0_i32, %c0_i32_0 : i32, i32
  }
  func.func @transform_8(%arg0: i32) -> (i32, i32) {
    %c0_i32 = arith.constant 0 : i32
    %c0_i32_0 = arith.constant 0 : i32
    %c0_i32_1 = arith.constant 0 : i32
    return %c0_i32, %c0_i32_0 : i32, i32
  }
  func.func @transform_9(%arg0: i32) -> (i32, i32) {
    %c0_i32 = arith.constant 0 : i32
    %c0_i32_0 = arith.constant 0 : i32
    return %arg0, %c0_i32 : i32, i32
  }
}

</mosaic_0001>

<bundles_post_ra>
// kernel: tpu_custom_call.1
= control target key start
LH: loop header
LB: loop body
LE: loop exit
PB: predicated region body
PF: predicated region fallthrough
CT: control target
= control target key end

     0   :  { %14 = vsyncpa [#allocation3], 0  ;;  %s1680_s0 = inlined_call_operand.vmem [shape: f32[16,32], index: 0, kind: input, shape index: {}]   ;;  %s1681_s1 = inlined_call_operand.vmem [shape: f32[16,32], index: 1, kind: input, shape index: {}]   ;;  %s1682_s2 = inlined_call_operand.vmem [shape: f32[16,32], index: 2, kind: input, shape index: {}]   ;;  %s1683_s3 = inlined_call_operand.hbm [shape: bf16[288,96], index: 3, kind: input, shape index: {}]   ;;  %s1684_s4 = inlined_call_operand.vmem [shape: f32[5,96], index: 4, kind: input, shape index: {}]   ;;  %s1685_s5 = inlined_call_operand.vmem [shape: bf16[96,24], index: 5, kind: input, shape index: {}]   ;;  %s1686_s6 = inlined_call_operand.vmem [shape: bf16[72,96], index: 6, kind: input, shape index: {}]   ;;  %s1687_s7 = inlined_call_operand.vmem [shape: bf16[96,32], index: 7, kind: input, shape index: {}]   ;;  %s1688_s8 = inlined_call_operand.vmem [shape: bf16[32,16], index: 8, kind: input, shape index: {}]   ;;  %s1689_s9 = inlined_call_operand.hbm [shape: f32[16,16], index: 9, kind: output, shape index: {}]  }
   0x1   :  { %15 = vsyncpa [#allocation4], 0 }
   0x2   :  { %17 = vsyncpa [#allocation4 + $0x1], 0  ;;  %s1474_s30 = smov 0   ;;  %s1476_s10 = smov 0  }
   0x3   :  { %s1478_s11 = smov 0   ;;  %s1480_s12 = smov 0  }
   0x4 LB: > { %s1495_s13 = sadd.s32 4294967295, %s1416_s12   ;;  %s1048_s14 = sadd.s32 4294967294, %s1416_s12   ;;  %s1416_s12 = sphi %s1480_s12, %s1695_s12   ;;  %s1412_s11 = sphi %s1478_s11, %s1694_s11   ;;  %s1408_s10 = sphi %s1476_s10, %s1693_s10   ;;  %s1404_s30 = sphi %s1474_s30, %s1692_s30  }
   0x5   : > { %s1499_s15 = sadd.s32 1, %s1416_s12   ;;  %s234_s16 = sadd.s32 1, %s1412_s11 }
   0x6   : > { %s231_s17 = ssub.s32 %s1416_s12, %s1499_s15  ;;  %p244_p0 = scmp.ne.s32.totalorder %s1412_s11, %s1408_s10 }
   0x7   : > { %p232_p1 = scmp.eq.s32.totalorder %s231_s17, 0  ;;  %p245_p2 = scmp.eq.s32.totalorder %s1495_s13, 1 }
   0x8   : > { %p250_p3 = scmp.ne.s32.totalorder %s1408_s10, %s1404_s30  ;;  %p251_p4 = scmp.eq.s32.totalorder %s1048_s14, 1 }
   0x9   : > { %s1510_s18 = scalar_select %p232_p1, %s1412_s11, %s234_s16  }
   0xa   : > { %p1512_p5 = por %p245_p2, %p244_p0  ;;  %p1516_p6 = por %p251_p4, %p250_p3 }
   0xb   : > { %p1049_p7 = scmp.ge.s32.totalorder %s1416_s12, 1  ;;  %p258_p8 = scmp.lt.s32.totalorder %s1416_s12, 3 }
   0xc   : > { %p1262_p9 = scmp.eq.s32.totalorder %s1495_s13, 0  ;;  %s269_s23 = sshll.u32 %s1683_s3, 4  ;;  %s270_s23 = int_to_ptr.hbm [resolvable:$true] %s269_s23 }
   0xd   : > { %p259_p10 = pnand %p1049_p7, %p258_p8  ;;  %s1418_s24 = smov [#allocation2]  }
   0xe   : > { %s271_s25 = sshll.u32 %s1418_s24, 4  ;;  %s1419_s26 = smov 64   ;;  %s272_s25 = int_to_ptr.vmem [resolvable:$true] %s271_s25 }
   0xf   : > { %p1254_p11 = pneg %p259_p10  ;;  %s1420_s27 = smov 4  }
  0x10   : > { %323 = sbr.rel (%p259_p10) target bundleno = 1247 (0x4df), region = 56 }
  0x11   : > { %p1255_p12 = pnand %p1262_p9, %p1254_p11 }
  0x13   : > { %1257 = dma.hbm_to_vmem [thread:$0]  (!%p1255_p12), %s270_s23, 2304, %s272_s25, [#allocation3], %s1419_s26, %s1419_s26, %s1420_s27  }
  0x15   : > { %1395 = dma.done.wait (%p1262_p9), [#allocation3], 2304  }
  0x16   : > { %1397 = vsyncadd (%p1262_p9), [#allocation3], 4294964992  ;;  %p367_p13 = scmp.lt.s32.totalorder %s1495_s13, 1  ;;  %v1218_v1 = vld [vmem:[#allocation2 + $0x28] sm:$0xff]  ;;  %s1421_s21 = smov 32   ;;  %v1224_v2 = vld [vmem:[#allocation2 + $0x58] sm:$0xff] }
  0x17   : > { %v1230_v3 = vld [vmem:[#allocation2 + $0x88] sm:$0xff]  ;;  %452 = vmatpush.bf16.msra.mxu0 %v1218_v1  ;;  %v1217_v4 = vld [vmem:[#allocation2 + $0x20] sm:$0xff]  ;;  %515 = vmatpush.bf16.msra.mxu1 %v1224_v2  ;;  %v1223_v5 = vld [vmem:[#allocation2 + $0x50] sm:$0xff]  ;;  %s1422_s25 = smov 64   ;;  %vm391_vm0 = vcmask 261120   ;;  %vm393_vm1 = vcmask 523264  }
  0x18   : > { %s368_s28 = scalar_select %p367_p13, %s1495_s13, 1  ;;  %578 = vmatpush.bf16.msra.mxu2 %v1230_v3  ;;  %v1229_v6 = vld [vmem:[#allocation2 + $0x80] sm:$0xff]  ;;  %v1216_v8 = vld [vmem:[#allocation2 + $0x18] sm:$0xff]  ;;  %v1222_v9 = vld [vmem:[#allocation2 + $0x48] sm:$0xff]  ;;  %vm446_vm2 = vcmask 785408   ;;  %vm742_vm3 = vcmask 1043456  }
  0x19   : > { %v1228_v10 = vld [vmem:[#allocation2 + $0x78] sm:$0xff]  ;;  %v1215_v11 = vld [vmem:[#allocation2 + $0x10] sm:$0xff]  ;;  %v1221_v12 = vld [vmem:[#allocation2 + $0x40] sm:$0xff]  ;;  %s1423_s26 = smov 96   ;;  %vm738_vm4 = vcmask 195584   ;;  %vm923_vm5 = vcmask 130048  }
  0x1a   : > { %s1534_s29 = sshll.u32 %s368_s28, 3  ;;  %v1227_v13 = vld [vmem:[#allocation2 + $0x70] sm:$0xff]  ;;  %v1214_v14 = vld [vmem:[#allocation2 + $0x8] sm:$0xff]  ;;  %v1220_v15 = vld [vmem:[#allocation2 + $0x38] sm:$0xff] }
  0x1b   : > { %s374_s17 = scalar_lea.vmem %s1681_s1, %s1534_s29  ;;  %s378_s24 = scalar_lea.vmem %s1682_s2, %s1534_s29  ;;  %453 = vmatpush.bf16.msra.mxu0 %v1217_v4  ;;  %516 = vmatpush.bf16.msra.mxu1 %v1223_v5  ;;  %v1226_v16 = vld [vmem:[#allocation2 + $0x68] sm:$0xff]  ;;  %v1213_v17 = vld [vmem:[#allocation2] sm:$0xff]  ;;  %v1219_v18 = vld [vmem:[#allocation2 + $0x30] sm:$0xff] }
  0x1c   : > { %v381_v0 = vld [vmem:[%s374_s17] sm:$0xff]  ;;  %579 = vmatpush.bf16.msra.mxu2 %v1229_v6  ;;  %v1236_v20 = vld [vmem:[%s1685_s5 + $0x28] sm:$0xff]  ;;  %v1234_v22 = vld [vmem:[%s1685_s5 + $0x18] sm:$0xff]  ;;  %s370_s27 = scalar_lea.vmem %s1680_s0, %s1534_s29 }
  0x1d   : > { %384 = vrot.lane.b32.xlu0 %v381_v0, %s1421_s21  ;;  %v382_v7 = vld [vmem:[%s378_s24] sm:$0xff]  ;;  %656 = vmatpush.bf16.msra.mxu3 %v1236_v20  ;;  %v1233_v23 = vld [vmem:[%s1685_s5 + $0x10] sm:$0xff]  ;;  %v1232_v30 = vld [vmem:[%s1685_s5 + $0x8] sm:$0xff]  ;;  %s364_s24 = sand.u32 1, %s1408_s10  }
  0x1e   : > { %v1225_v19 = vld [vmem:[#allocation2 + $0x60] sm:$0xff]  ;;  %v728_v55 = vld [vmem:[%s1686_s6 + $0x14] sm:$0xf]  ;;  %v725_v56 = vld [vmem:[%s1686_s6 + $0x8] sm:$0xf]  ;;  %s938_s17 = scalar_lea.sflag [#allocation4], %s364_s24 }
  0x1f   : > { %454 = vmatpush.bf16.msra.mxu0 %v1216_v8  ;;  %517 = vmatpush.bf16.msra.mxu1 %v1222_v9  ;;  %v1235_v21 = vld [vmem:[%s1685_s5 + $0x20] sm:$0xff]  ;;  %v734_v57 = vunpack.c.l.b16 %v728_v55  ;;  %v764_v58 = vunpack.c.l.b16 %v725_v56  ;;  %v1238_v63 = vld [vmem:[%s1686_s6 + $0xc] sm:$0xff] }
  0x20   : > { %580 = vmatpush.bf16.msra.mxu2 %v1228_v10  ;;  %v380_v25 = vld [vmem:[%s370_s27] sm:$0xff] }
  0x21   : > { %657 = vmatpush.bf16.msra.mxu3 %v1235_v21  ;;  %v1231_v31 = vld [vmem:[%s1685_s5] sm:$0xff]  ;;  %v736_v59 = vpack.c.b16 %v734_v57, %v734_v57  ;;  %v766_v60 = vpack.c.b16 %v764_v58, %v764_v58 }
  0x22   : > { %v1303_v32 = vld [vmem:[%s1684_s4] ss:$0 sm:$0xff]  ;;  %v1304_v33 = vld [vmem:[%s1684_s4 + $0x1] ss:$0 sm:$0xff] }
  0x23   : > { %455 = vmatpush.bf16.msra.mxu0 %v1215_v11  ;;  %518 = vmatpush.bf16.msra.mxu1 %v1221_v12  ;;  %v744_v61 = vsel %vm742_vm3, %v736_v59, 0  ;;  %v772_v62 = vsel %vm742_vm3, %v766_v60, 0  ;;  %v1237_v0 = vld [vmem:[%s1686_s6] sm:$0xff]  ;;  %v1239_v12 = vld [vmem:[%s1686_s6 + $0x18] sm:$0xff] }
  0x24   : > { %581 = vmatpush.bf16.msra.mxu2 %v1227_v13  ;;  %v789_v3 = vld [vmem:[%s1686_s6 + $0x20] sm:$0xf] }
  0x25   : > { %388 = vrot.lane.b32.xlu0 %v382_v7, %s1422_s25  ;;  %658 = vmatpush.bf16.msra.mxu3 %v1234_v22  ;;  %v795_v5 = vunpack.c.l.b16 %v789_v3 }
  0x27   : > { %456 = vmatpush.bf16.msra.mxu0 %v1214_v14  ;;  %519 = vmatpush.bf16.msra.mxu1 %v1220_v15  ;;  %v797_v7 = vpack.c.b16 %v795_v5, %v795_v5 }
  0x28   : > { %582 = vmatpush.bf16.msra.mxu2 %v1226_v16 }
  0x29   : > { %659 = vmatpush.bf16.msra.mxu3 %v1233_v23  ;;  %v803_v11 = vsel %vm742_vm3, %v797_v7, 0 }
  0x2b   : > { %457 = vmatpush.bf16.msra.mxu0 %v1213_v17  ;;  %520 = vmatpush.bf16.msra.mxu1 %v1219_v18 }
  0x2c   : > { %583 = vmatpush.bf16.msra.mxu2 %v1225_v19 }
  0x2d   : > { %660 = vmatpush.bf16.msra.mxu3 %v1232_v30 }
  0x2f   : > { %674 = vmatpush.bf16.msrb.mxu0 %v1236_v20  ;;  %692 = vmatpush.bf16.msrb.mxu1 %v1236_v20 }
  0x30   : > { %752 = vmatpush.bf16.msrb.mxu2 %v744_v61 }
  0x31   : > { %661 = vmatpush.bf16.msra.mxu3 %v1231_v31 }
  0x33   : > { %675 = vmatpush.bf16.msrb.mxu0 %v1235_v21  ;;  %693 = vmatpush.bf16.msrb.mxu1 %v1235_v21 }
  0x34   : > { %753 = vmatpush.bf16.msrb.mxu2 %v1238_v63 }
  0x35   : > { %780 = vmatpush.bf16.msrb.mxu3 %v772_v62 }
  0x37   : > { %676 = vmatpush.bf16.msrb.mxu0 %v1234_v22  ;;  %694 = vmatpush.bf16.msrb.mxu1 %v1234_v22 }
  0x39   : > { %781 = vmatpush.bf16.msrb.mxu3 %v1237_v0 }
  0x3b   : > { %677 = vmatpush.bf16.msrb.mxu0 %v1233_v23  ;;  %695 = vmatpush.bf16.msrb.mxu1 %v1233_v23 }
  0x3f   : > { %678 = vmatpush.bf16.msrb.mxu0 %v1232_v30  ;;  %696 = vmatpush.bf16.msrb.mxu1 %v1232_v30  ;;  %v1245_v30 = vld [vmem:[%s1687_s7 + $0x28] sm:$0xff] }
  0x43   : > { %679 = vmatpush.bf16.msrb.mxu0 %v1231_v31  ;;  %697 = vmatpush.bf16.msrb.mxu1 %v1231_v31  ;;  %v1244_v31 = vld [vmem:[%s1687_s7 + $0x20] sm:$0xff] }
  0x8f   : > { %v385_v24 = vpop.permute.xlu0 %384 }
  0x90   : > { %v392_v26 = vsel %vm391_vm0, %v380_v25, %v385_v24 }
  0x97   : > { %v389_v27 = vpop.permute.xlu0 %388 }
  0x98   : > { %v394_v28 = vsel %vm393_vm1, %v392_v26, %v389_v27 }
  0x99   : > { %v395_v29 = vpack.c.bf16 %v394_v28, %v394_v28 }
  0x9b   : > { %1082 = vmatmul.msk.bf16.vlgmr.msra.gmra.mxu0 %vm446_vm2, %v395_v29  ;;  %1107 = vmatmul.msk.bf16.vlgmr.msra.gmra.mxu1 %vm446_vm2, %v395_v29 }
  0x9c   : > { %1132 = vmatmul.msk.bf16.vlgmr.msra.gmra.mxu2 %vm446_vm2, %v395_v29 }
  0x9d   : > { %811 = vmatpush.bf16.msra.mxu2 %v803_v11 }
  0xa1   : > { %812 = vmatpush.bf16.msra.mxu2 %v1239_v12 }
 0x118   : > { %v459_v34 = vpop.f32.mrf.mxu0  ;;  %v522_v35 = vpop.f32.mrf.mxu1 }
 0x119   : > { %v460_v36 = vadd.f32 %v1303_v32, %v459_v34  ;;  %v523_v37 = vadd.f32 %v1304_v33, %v522_v35  ;;  %v1243_v32 = vld [vmem:[%s1687_s7 + $0x18] sm:$0xff]  ;;  %v1242_v33 = vld [vmem:[%s1687_s7 + $0x10] sm:$0xff]  ;;  %v1241_v34 = vld [vmem:[%s1687_s7 + $0x8] sm:$0xff] }
 0x11a   : > { %v1240_v35 = vld [vmem:[%s1687_s7] sm:$0xff] }
 0x11b   : > { %597 = vrot.lane.b32.xlu2 %v523_v37, %s1421_s21  ;;  %590 = vrot.lane.b32.xlu1 %v523_v37, %s1423_s26  ;;  %v613_v38 = vmul.f32 %v523_v37, %v460_v36  ;;  %s1054_s26 = sshll.u32 %s364_s24, 3  ;;  %s1210_s21 = sshll.u32 %s1495_s13, 3 }
 0x11c   : > { %s948_s28 = scalar_lea.hbm %s1689_s9, %s1210_s21  ;;  %s366_s14 = scalar_lea.vmem [#allocation5], %s1054_s26 }
 0x11d   : > { %v614_v39 = vpack.c.bf16 %v613_v38, %v613_v38  ;;  %s950_s29 = sshll.u32 %s366_s14, 4  ;;  %s952_s16 = sshll.u32 %s948_s28, 4  ;;  %s951_s29 = int_to_ptr.vmem [resolvable:$true] %s950_s29  ;;  %s953_s16 = int_to_ptr.hbm [resolvable:$true] %s952_s16 }
 0x11e   : > { %s1364_s22 = sshra.s32 %s953_s16, 4  ;;  %s1370_s26 = scalar_lea.hbm %s1689_s9, 16  ;;  %s1365_s22 = int_to_ptr.hbm [resolvable:$true] %s1364_s22 }
 0x11f   : > { %v1580_v40 = vpop.f32.mrf.mxu2  ;;  %1157 = vmatmul.msk.bf16.vlgmr.msra.gmra.mxu3 %vm446_vm2, %v614_v39  ;;  %s1366_s23 = scalar_lea.hbm %s1365_s22, 8  ;;  %p1371_p3 = scmp.lt.s32.totalorder %s1365_s22, %s1689_s9 }
 0x120   : > { %v461_v41 = vpop.f32.mrf.mxu0  ;;  %v524_v42 = vpop.f32.mrf.mxu1  ;;  %876 = vmatpush.bf16.msra.mxu3 %v1245_v30  ;;  %p1367_p0 = scmp.ne.s32.totalorder %s1365_s22, %s1366_s23  ;;  %p1372_p4 = scmp.lt.s32.totalorder %s1370_s26, %s1366_s23 }
 0x122   : > { %p1368_p1 = pnand %p1367_p0, %p1512_p5  ;;  %p1373_p7 = por %p1372_p4, %p1371_p3 }
 0x123   : > { %593 = vrot.lane.b32.xlu1 %v523_v37, %s1422_s25  ;;  %v1246_v37 = vld [vmem:[%s1688_s8] sm:$0xff] }
 0x124   : > { %877 = vmatpush.bf16.msra.mxu3 %v1244_v31  ;;  %p1369_p2 = pneg %p1368_p1 }
 0x126   : > { %p1374_p8 = pnand %p1373_p7, %p1369_p2 }
 0x127   : > { %v587_v43 = vpop.f32.mrf.mxu2 }
 0x128   : > { %878 = vmatpush.bf16.msra.mxu3 %v1243_v32  ;;  %v1305_v43 = vld [vmem:[%s1684_s4 + $0x2] ss:$0 sm:$0xff] }
 0x12c   : > { %879 = vmatpush.bf16.msra.mxu3 %v1242_v33 }
 0x130   : > { %880 = vmatpush.bf16.msra.mxu3 %v1241_v34 }
 0x134   : > { %881 = vmatpush.bf16.msra.mxu3 %v1240_v35 }
 0x175   : > { %v598_v45 = vpop.permute.xlu2 %597 }
 0x18d   : > { %v591_v44 = vpop.permute.xlu1 %590 }
 0x195   : > { %v594_v46 = vpop.permute.xlu1 %593 }
 0x196   : > { %v596_v47 = vsel %vm393_vm1, %v591_v44, %v594_v46  ;;  %v600_v48 = vsel %vm391_vm0, %v594_v46, %v598_v45  ;;  %v586_v46 = vadd.f32 %v1305_v43, %v1580_v40  ;;  %v1307_v40 = vld [vmem:[%s1684_s4 + $0x4] ss:$0 sm:$0xff] }
 0x197   : > { %v667_v49 = vmul.f32 %v596_v47, %v460_v36  ;;  %v685_v50 = vmul.f32 %v600_v48, %v460_v36  ;;  %v1247_v36 = vld [vmem:[%s1688_s8 + $0x8] sm:$0xff] }
 0x198   : > { %916 = vmatpush.bf16.msra.mxu0 %v1247_v36 }
 0x199   : > { %v668_v51 = vpack.c.bf16 %v667_v49, %v667_v49  ;;  %v686_v52 = vpack.c.bf16 %v685_v50, %v685_v50 }
 0x19b   : > { %1158 = vmatmul.msk.bf16.vlgmr.msrb.gmra.mxu0 %vm446_vm2, %v668_v51  ;;  %1159 = vmatmul.msk.bf16.vlgmr.msrb.gmra.mxu1 %vm446_vm2, %v686_v52  ;;  %v1306_v51 = vld [vmem:[%s1684_s4 + $0x3] ss:$0 sm:$0xff] }
 0x19c   : > { %917 = vmatpush.bf16.msra.mxu0 %v1246_v37 }
 0x1a2   : > { %v663_v53 = vpop.f32.mrf.mxu3 }
 0x1aa   : > { %v665_v54 = vpop.f32.mrf.mxu3 }
 0x218   : > { %v681_v1 = vpop.f32.mrf.mxu0  ;;  %v699_v2 = vpop.f32.mrf.mxu1 }
 0x219   : > { %v703_v4 = vmax.f32 %v663_v53, %v681_v1 }
 0x21b   : > { %v704_v6 = vmax.f32 %v703_v4, %v699_v2 }
 0x21d   : > { %v705_v8 = vsub.f32 %v663_v53, %v704_v6  ;;  %v708_v9 = vsub.f32 %v681_v1, %v704_v6  ;;  %v711_v10 = vsub.f32 %v699_v2, %v704_v6 }
 0x21f   : > { %v706_v13 = vmul.f32 1.442695, %v705_v8  ;;  %v709_v14 = vmul.f32 1.442695, %v708_v9  ;;  %v712_v15 = vmul.f32 1.442695, %v711_v10 }
 0x220   : > { %v683_v16 = vpop.f32.mrf.mxu0  ;;  %v701_v17 = vpop.f32.mrf.mxu1 }
 0x221   : > { %1308 = vpow2.f32 %v706_v13 }
 0x222   : > { %1310 = vpow2.f32 %v709_v14 }
 0x223   : > { %1312 = vpow2.f32 %v712_v15 }
 0x227   : > { %v1309_v18 = vpop.eup %1308 }
 0x228   : > { %v1311_v19 = vpop.eup %1310 }
 0x229   : > { %v714_v20 = vadd.f32 %v1311_v19, %v1309_v18  ;;  %v1313_v21 = vpop.eup %1312 }
 0x22b   : > { %v715_v22 = vadd.f32 %v1313_v21, %v714_v20 }
 0x22d   : > { %1314 = vrcp.f32 %v715_v22 }
 0x233   : > { %v1315_v23 = vpop.eup %1314 }
 0x234   : > { %v719_v24 = vmul.f32 %v1315_v23, %v1311_v19  ;;  %v717_v25 = vmul.f32 %v1315_v23, %v1309_v18  ;;  %v721_v28 = vmul.f32 %v1315_v23, %v1313_v21 }
 0x236   : > { %v720_v26 = vpack.c.bf16 %v719_v24, %v719_v24  ;;  %v718_v27 = vpack.c.bf16 %v717_v25, %v717_v25  ;;  %v722_v29 = vpack.c.bf16 %v721_v28, %v721_v28 }
 0x238   : > { %1164 = vmatmul.msk.bf16.vlgmr.msrb.gmra.mxu2 %vm738_vm4, %v720_v26  ;;  %1169 = vmatmul.msk.bf16.vlgmr.msrb.gmra.mxu3 %vm738_vm4, %v718_v27 }
 0x248   : > { %1174 = vmatmul.msk.bf16.vlgmr.msra.gmra.mxu2 %vm738_vm4, %v722_v29 }
 0x2bb   : > { %v755_v38 = vpop.f32.mrf.mxu2  ;;  %v783_v39 = vpop.f32.mrf.mxu3 }
 0x2bc   : > { %v784_v44 = vadd.f32 %v783_v39, %v755_v38 }
 0x2c3   : > { %v757_v41 = vpop.f32.mrf.mxu2  ;;  %v785_v42 = vpop.f32.mrf.mxu3 }
 0x2cb   : > { %v814_v45 = vpop.f32.mrf.mxu2 }
 0x2cc   : > { %v818_v47 = vadd.f32 %v814_v45, %v784_v44 }
 0x2ce   : > { %v819_v48 = vmul.f32 %v818_v47, %v586_v46 }
 0x2d0   : > { %v820_v49 = vpack.c.bf16 %v819_v48, %v819_v48 }
 0x2d2   : > { %1199 = vmatmul.msk.bf16.vlgmr.msra.gmra.mxu3 %vm446_vm2, %v820_v49 }
 0x2d3   : > { %v816_v50 = vpop.f32.mrf.mxu2 }
 0x355   : > { %v883_v52 = vpop.f32.mrf.mxu3 }
 0x356   : > { %v884_v53 = vadd.f32 %v1306_v51, %v883_v52 }
 0x358   : > { %v887_v54 = vmax.f32 %v884_v53, 0.0 }
 0x35a   : > { %v888_v55 = vpack.c.bf16 %v887_v54, %v887_v54 }
 0x35c   : > { %1208 = vmatmul.msk.bf16.vlgmr.msra.gmra.mxu0 %vm391_vm0, %v888_v55 }
 0x35d   : > { %v885_v56 = vpop.f32.mrf.mxu3 }
 0x3d9   : > { %v919_v57 = vpop.f32.mrf.mxu0 }
 0x3da   : > { %v920_v58 = vadd.f32 %v1307_v40, %v919_v57 }
 0x3dc   : > { %v924_v59 = vsel %vm923_vm5, %v920_v58, -inf }
 0x3dd   : > { %925 = vmax.xlane.f32.xlu2 %v924_v59 }
 0x3e1   : > { %v921_v60 = vpop.f32.mrf.mxu0 }
 0x450   : > { %v926_v61 = vpop.xlane.xlu2 %925 }
 0x451   : > { %v927_v62 = vsub.f32 %v920_v58, %v926_v61 }
 0x453   : > { %v928_v63 = vmul.f32 1.442695, %v927_v62 }
 0x455   : > { %1316 = vpow2.f32 %v928_v63 }
 0x45b   : > { %v1317_v0 = vpop.eup %1316 }
 0x45c   : > { %v930_v1 = vsel %vm923_vm5, %v1317_v0, 0.0 }
 0x45d   : > { %931 = vadd.xlane.f32.xlu0 %v930_v1 }
 0x4d0   : > { %v932_v2 = vpop.xlane.xlu0 %931 }
 0x4d1   : > { %1318 = vlog2.f32 %v932_v2 }
 0x4d7   : > { %v1319_v3 = vpop.eup %1318 }
 0x4d8   : > { %v934_v4 = vmul.f32 0.6931472, %v1319_v3 }
 0x4da   : > { %v935_v5 = vsub.f32 %v927_v62, %v934_v4 }
 0x4dc   : > { %936 = vst.msk [vmem:[%s366_s14] sm:$0xff] %vm923_vm5, %v935_v5 }
 0x4dd   : > { %1377 = shalt.err (!%p1374_p8)
}
 0x4de   : > { %1252 = dma.vmem_to_hbm [thread:$0]  (%p1512_p5), %s951_s29, 128, %s953_s16, %s938_s17  }
 0x4df PF: > { %p1264_p9 = scmp.ge.s32.totalorder %s1416_s12, 2  ;;  %s964_s24 = sand.u32 1, %s1404_s30  }
 0x4e0   : > { %s965_s28 = scalar_lea.sflag [#allocation4], %s964_s24 }
 0x4e1   : > { %p1259_p10 = pnand %p1264_p9, %p1516_p6 }
 0x4e3   : > { %p1260_p11 = pneg %p1259_p10 }
 0x4e5   : > { %1399 = dma.done.wait (%p1260_p11), %s965_s28, 128  }
 0x4e6   : > { %1401 = vsyncadd (%p1260_p11), %s965_s28, 4294967168  ;;  %p20_p12 = scmp.ge.s32.totalorder %s1499_s15, 4   ;;  %s1692_s30 = smov %s1408_s10 }
 0x4e7   : > { %s1693_s10 = smov %s1412_s11  ;;  %s1694_s11 = smov %s1510_s18 }
 0x4e8   : > { %s1695_s12 = smov %s1499_s15  ;;  %22 = sbr.rel (!%p20_p12) target bundleno = 4 (0x4), region = 102 }
 0x4ed   :  { %971 = vsyncpa [#allocation3], 1 }
 0x4ee   :  { %973 = vsyncpa [#allocation3 + $0x1], 1 }
 0x4ef   :  { %974 = vsyncpa [#allocation4], 1 }
 0x4f0   :  { %976 = vsyncpa [#allocation4 + $0x1], 1 }

</bundles_post_ra>
